<compile_context>
chip_gen: v7x
topology: tpu7x:2x2x1
jax: 0.10.0
libtpu: 0.0.40
codegen_flags: <defaults>
</compile_context>

<pallas_src>
import functools
import math

import jax
import jax.numpy as jnp
from jax.experimental import pallas as pl
from jax.experimental.pallas import tpu as pltpu

_SQRT2 = math.sqrt(2.0)


def _round_up(n, m):
    return ((n + m - 1) // m) * m


def _pick_block(t, want, multiple):
    """Block size: `multiple`-aligned, <= want, >=2 grid points when t allows (v7x)."""
    t_al = _round_up(max(int(t), 1), multiple)
    b = min(_round_up(int(want), multiple), t_al)
    if t_al > multiple and b >= t_al:        # grid would be 1; split so both TCs work
        b = _round_up(-(-t_al // 2), multiple)
    return max(multiple, b)


def _std_normal_cdf(z):
    # Phi(z) via Abramowitz–Stegun 7.1.26 erf (|abs err| < 1.5e-7) — VPU/EUP ops only.
    # The tail probability is evaluated directly (no 1 - (1 - tail) cancellation),
    # which matters when log() of the result is taken near the 1e-7 clip bound.
    x = jnp.abs(z) * (1.0 / _SQRT2)
    t = 1.0 / (1.0 + 0.3275911 * x)
    poly = t * (0.254829592 + t * (-0.284496736 + t * (1.421413741
               + t * (-1.453152027 + t * 1.061405429))))
    tail = 0.5 * poly * jnp.exp(-x * x)      # = Phi(-|z|)
    return jnp.where(z >= 0.0, 1.0 - tail, tail)


# ----------------------------------------------------------------------------
# predictive_distribution:
#   theta_t = Phi( x_t . mean / sqrt(2*noise^2 + x_t^2 . exp(log_sigma)^2) )
# Time on lanes: x is (F, tile), params are (F, 1) columns broadcast across lanes,
# reductions are sublane reduces over F, output is a lane-dense (1, tile) row.
# ----------------------------------------------------------------------------
def _predictive_kernel(x_ref, mean_ref, var_ref, theta_ref, *, noise):
    x = x_ref[...]                                        # (F, tile)
    m = mean_ref[...]                                     # (F, 1)
    var = var_ref[...]                                    # (F, 1)  == exp(log_sigma)^2
    num = jnp.sum(x * m, axis=0, keepdims=True)           # (1, tile)
    den2 = 2.0 * noise * noise + jnp.sum(x * x * var, axis=0, keepdims=True)
    theta_ref[...] = _std_normal_cdf(num * jax.lax.rsqrt(den2))


def vpr_predictive(inputs, mean, log_sigma, *, noise=1.0, time_tile=1024):
    T, F = inputs.shape
    tile = _pick_block(T, time_tile, 128)
    T_pad = _round_up(T, tile)

    xT = jnp.pad(inputs.T, ((0, 0), (0, T_pad - T)))      # (F, T_pad): time lane-dense
    var_col = jnp.exp(2.0 * log_sigma)                    # hoisted: constant across tiles

    kernel = functools.partial(_predictive_kernel, noise=float(noise))
    theta_row = pl.pallas_call(
        kernel,
        out_shape=jax.ShapeDtypeStruct((1, T_pad), jnp.float32),
        grid=(T_pad // tile,),
        in_specs=[
            pl.BlockSpec((F, tile), lambda i: (0, i)),
            pl.BlockSpec((F, 1), lambda i: (0, 0)),
            pl.BlockSpec((F, 1), lambda i: (0, 0)),
        ],
        out_specs=pl.BlockSpec((1, tile), lambda i: (0, i)),
        compiler_params=pltpu.CompilerParams(dimension_semantics=("parallel",)),
    )(xT, mean, var_col)
    return theta_row.reshape(T_pad, 1)[:T]


# ----------------------------------------------------------------------------
# Per-timestep MC NLL, batched over the whole sequence:
#   nll_t = -1/S * sum_s log Phi( (2 y_t - 1) * z_ts )          [Phi(-z) = 1 - Phi(z)]
#   z_ts  = ( sum_f eps_tsf * x_tf * sigma_f  +  x_t . mean ) / (sqrt(2) * noise)
# eps arrives as (TB, F, S_pad): samples on lanes, features on sublanes, so the
# contraction and the transcendental path are lane-dense.  KL(q||p) is constant
# across timesteps and is added by the wrapper.
# ----------------------------------------------------------------------------
def _loss_nll_kernel(eps_ref, x_ref, y_ref, mean_ref, sigma_ref, nll_ref,
                     *, noise, n_samples):
    s_pad = eps_ref.shape[2]
    inv_scale = 1.0 / (_SQRT2 * noise)
    inv_n = 1.0 / float(n_samples)

    eps = eps_ref[...]                                    # (TB, F, S_pad)
    x = x_ref[...]                                        # (TB, F, 1)
    y = y_ref[...]                                        # (TB, 1, 1)
    mean = mean_ref[...]                                  # (1, F, 1)
    sigma = sigma_ref[...]                                # (1, F, 1)  == exp(log_sigma)

    xs = x * sigma                                        # (TB, F, 1)
    mdot = jnp.sum(x * mean, axis=1, keepdims=True)       # (TB, 1, 1)
    z = (jnp.sum(eps * xs, axis=1, keepdims=True) + mdot) * inv_scale   # (TB, 1, S_pad)

    # Fold the binary label in as a sign flip BEFORE the CDF (Phi(-z) = 1 - Phi(z)):
    # one log per sample instead of log + log1p, no 1-theta cancellation.
    sgn = 2.0 * y - 1.0                                   # (TB, 1, 1) in {-1, +1}
    theta = jnp.clip(_std_normal_cdf(sgn * z), 1e-7, 1.0 - 1e-7)
    logp = jnp.log(theta)                                 # (TB, 1, S_pad)
    if s_pad != n_samples:                                # mask padded MC lanes (static)
        s_ids = jax.lax.broadcasted_iota(jnp.int32, (1, 1, s_pad), 2)
        logp = jnp.where(s_ids < n_samples, logp, 0.0)
    nll_ref[...] = -jnp.sum(logp, axis=2, keepdims=True) * inv_n        # (TB, 1, 1)


def vpr_losses(inputs, targets, eps_all, mean, log_sigma, prior_mean, prior_log_sigma,
               *, noise=1.0, time_block=64):
    T, F = inputs.shape
    _, S, _ = eps_all.shape
    tb = _pick_block(T, time_block, 8)
    T_pad = _round_up(T, tb)
    S_pad = _round_up(S, 128)

    # Sample axis onto lanes, feature axis onto sublanes.  The swapaxes fuses with
    # the padding copy, so it does not add an extra pass over eps in HBM.
    eps3 = jnp.pad(jnp.swapaxes(eps_all, 1, 2),
                   ((0, T_pad - T), (0, 0), (0, S_pad - S)))            # (T_pad, F, S_pad)
    x3 = jnp.pad(inputs, ((0, T_pad - T), (0, 0)))[:, :, None]          # (T_pad, F, 1)
    y3 = jnp.pad(targets, ((0, T_pad - T), (0, 0)))[:, :, None]         # (T_pad, 1, 1)
    mean3 = mean.reshape(1, F, 1)
    sigma3 = jnp.exp(log_sigma).reshape(1, F, 1)          # hoisted: constant across steps

    kernel = functools.partial(_loss_nll_kernel, noise=float(noise), n_samples=int(S))
    nll = pl.pallas_call(
        kernel,
        out_shape=jax.ShapeDtypeStruct((T_pad, 1, 1), jnp.float32),
        grid=(T_pad // tb,),
        in_specs=[
            pl.BlockSpec((tb, F, S_pad), lambda i: (i, 0, 0)),   # eps draws
            pl.BlockSpec((tb, F, 1), lambda i: (i, 0, 0)),       # feature columns
            pl.BlockSpec((tb, 1, 1), lambda i: (i, 0, 0)),       # targets
            pl.BlockSpec((1, F, 1), lambda i: (0, 0, 0)),        # mean (constant)
            pl.BlockSpec((1, F, 1), lambda i: (0, 0, 0)),        # sigma (constant)
        ],
        out_specs=pl.BlockSpec((tb, 1, 1), lambda i: (i, 0, 0)),
        compiler_params=pltpu.CompilerParams(dimension_semantics=("parallel",)),
    )(eps3, x3, y3, mean3, sigma3)
    nll = nll.reshape(T_pad, 1)[:T]

    # KL(q || p) does not depend on t/x/y/eps — compute once here and add.
    kld = jnp.sum((prior_log_sigma - log_sigma)
                  + (jnp.exp(2.0 * log_sigma) + (mean - prior_mean) ** 2)
                    / (2.0 * jnp.exp(2.0 * prior_log_sigma)) - 0.5)
    return nll + kld


# ----------------------------------------------------------------------------
# Pure-JAX references (for correctness check only)
# ----------------------------------------------------------------------------
def _ref_predictive(inputs, mean, log_sigma, noise):
    num = inputs @ mean
    den = jnp.sqrt(2.0 * noise * noise + (inputs ** 2) @ jnp.exp(2.0 * log_sigma))
    return jax.scipy.stats.norm.cdf(num / den)


def _ref_losses(inputs, targets, eps_all, mean, log_sigma, prior_mean, prior_log_sigma, noise):
    sigma = jnp.exp(log_sigma)[:, 0]
    z = (jnp.einsum('tsf,tf->ts', eps_all, inputs * sigma[None, :])
         + (inputs @ mean[:, 0])[:, None]) / (_SQRT2 * noise)
    theta = jnp.clip(jax.scipy.stats.norm.cdf(z), 1e-7, 1.0 - 1e-7)
    logp = targets * jnp.log(theta) + (1.0 - targets) * jnp.log1p(-theta)
    nll = -jnp.mean(logp, axis=-1, keepdims=True)
    kl = (prior_log_sigma - log_sigma) + (jnp.exp(2.0 * log_sigma)
         + (mean - prior_mean) ** 2) / (2.0 * jnp.exp(2.0 * prior_log_sigma)) - 0.5
    return nll + jnp.sum(kl)


if __name__ == "__main__":
    NOISE = 1.0
    key = jax.random.PRNGKey(0)
    k_x, k_y, k_eps, k_m, k_s, k_x2, k_y2, k_eps2 = jax.random.split(key, 8)

    # ---- Small case matching the module's usage: T=8 timesteps, F=32, S=100 MC draws
    T, F, S = 8, 32, 100
    inputs = jax.random.normal(k_x, (T, F), dtype=jnp.float32)
    targets = jax.random.bernoulli(k_y, 0.5, (T, 1)).astype(jnp.float32)

    # Deterministic parameter init, matching nn.Parameter(torch.zeros(num_features, 1)).
    mean = jnp.zeros((F, 1), jnp.float32)
    log_sigma = jnp.zeros((F, 1), jnp.float32)
    prior_mean = jnp.zeros((F, 1), jnp.float32)
    prior_log_sigma = jnp.zeros((F, 1), jnp.float32)

    # forward(): thetas for Bernoulli(...) and the self.weights stack.
    thetas = vpr_predictive(inputs, mean, log_sigma, noise=NOISE)            # (T, 1)
    weights = jnp.broadcast_to(mean[None], (T, F, 1))                        # (T, F, 1)

    # Per-step variational loss — single batched pallas_call over all timesteps.
    eps_all = jax.random.normal(k_eps, (T, S, F), dtype=jnp.float32)
    losses = vpr_losses(inputs, targets, eps_all, mean, log_sigma,
                        prior_mean, prior_log_sigma, noise=NOISE)            # (T, 1)
    jax.block_until_ready((thetas, weights, losses))

    # Correctness vs pure-JAX references.  Loss tolerances are loose because the
    # Abramowitz–Stegun erf error (~1.5e-7) is amplified by log() near the 1e-7 clip.
    assert jnp.allclose(thetas, _ref_predictive(inputs, mean, log_sigma, NOISE),
                        atol=1e-5), "theta mismatch"

    mean_r = 0.1 * jax.random.normal(k_m, (F, 1), dtype=jnp.float32)
    ls_r = 0.1 * jax.random.normal(k_s, (F, 1), dtype=jnp.float32)
    th2 = vpr_predictive(inputs, mean_r, ls_r, noise=NOISE)
    assert jnp.allclose(th2, _ref_predictive(inputs, mean_r, ls_r, NOISE),
                        atol=1e-4), "theta mismatch (random params)"

    ref_l = _ref_losses(inputs, targets, eps_all, mean, log_sigma,
                        prior_mean, prior_log_sigma, NOISE)
    assert jnp.allclose(losses, ref_l, rtol=2e-2, atol=5e-2), "loss mismatch (zero params)"

    loss_r = vpr_losses(inputs, targets, eps_all, mean_r, ls_r,
                        prior_mean, prior_log_sigma, noise=NOISE)
    ref_lr = _ref_losses(inputs, targets, eps_all, mean_r, ls_r,
                         prior_mean, prior_log_sigma, NOISE)
    assert jnp.allclose(loss_r, ref_lr, rtol=2e-2, atol=5e-2), "loss mismatch (random params)"

    # ---- Larger case: exercises multi-block grids (>=2 grid points, time padding)
    T2 = 200
    inputs2 = jax.random.normal(k_x2, (T2, F), dtype=jnp.float32)
    targets2 = jax.random.bernoulli(k_y2, 0.5, (T2, 1)).astype(jnp.float32)
    eps2 = jax.random.normal(k_eps2, (T2, S, F), dtype=jnp.float32)

    th_big = vpr_predictive(inputs2, mean_r, ls_r, noise=NOISE)
    loss_big = vpr_losses(inputs2, targets2, eps2, mean_r, ls_r,
                          prior_mean, prior_log_sigma, noise=NOISE)
    jax.block_until_ready((th_big, loss_big))
    assert jnp.allclose(th_big, _ref_predictive(inputs2, mean_r, ls_r, NOISE),
                        atol=1e-4), "theta mismatch (multi-block)"
    assert jnp.allclose(loss_big, _ref_losses(inputs2, targets2, eps2, mean_r, ls_r,
                                              prior_mean, prior_log_sigma, NOISE),
                        rtol=2e-2, atol=5e-2), "loss mismatch (multi-block)"

    print("KERNEL_OK")
</pallas_src>

<mosaic_0001>
module attributes {stable_mosaic.version = 11 : i64} {
  func.func @_predictive_kernel(%arg0: i32, %arg1: memref<32x128xf32, #tpu.memory_space<vmem>>, %arg2: memref<32x1xf32, #tpu.memory_space<vmem>>, %arg3: memref<32x1xf32, #tpu.memory_space<vmem>>, %arg4: memref<1x128xf32, #tpu.memory_space<vmem>>) attributes {dimension_semantics = [#tpu.dimension_semantics<parallel>], iteration_bounds = array<i64: 1>, scalar_prefetch = 0 : i64, scratch_operands = 0 : i64, tpu.core_type = #tpu.core_type<tc>, window_params = [{transform_indices = @transform_0, window_bounds = array<i64: 32, 128>}, {pipeline_mode = #tpu.pipeline_mode<synchronous>, transform_indices = @transform_1, window_bounds = array<i64: 32, 1>}, {pipeline_mode = #tpu.pipeline_mode<synchronous>, transform_indices = @transform_2, window_bounds = array<i64: 32, 1>}, {transform_indices = @transform_3, window_bounds = array<i64: 1, 128>}]} {
    %c0 = arith.constant 0 : index
    %c0_0 = arith.constant 0 : index
    %0 = vector.load %arg1[%c0, %c0_0] : memref<32x128xf32, #tpu.memory_space<vmem>>, vector<32x128xf32>
    %c0_1 = arith.constant 0 : index
    %c0_2 = arith.constant 0 : index
    %1 = vector.load %arg2[%c0_1, %c0_2] : memref<32x1xf32, #tpu.memory_space<vmem>>, vector<32x1xf32>
    %c0_3 = arith.constant 0 : index
    %c0_4 = arith.constant 0 : index
    %2 = vector.load %arg3[%c0_3, %c0_4] : memref<32x1xf32, #tpu.memory_space<vmem>>, vector<32x1xf32>
    %3 = vector.broadcast %1 : vector<32x1xf32> to vector<32x128xf32>
    %4 = arith.mulf %0, %3 : vector<32x128xf32>
    %cst = arith.constant dense<0.000000e+00> : vector<128xf32>
    %5 = vector.multi_reduction <add>, %4, %cst [0] : vector<32x128xf32> to vector<128xf32>
    %6 = vector.shape_cast %5 : vector<128xf32> to vector<1x128xf32>
    %7 = arith.mulf %0, %0 : vector<32x128xf32>
    %8 = vector.broadcast %2 : vector<32x1xf32> to vector<32x128xf32>
    %9 = arith.mulf %7, %8 : vector<32x128xf32>
    %cst_5 = arith.constant dense<0.000000e+00> : vector<128xf32>
    %10 = vector.multi_reduction <add>, %9, %cst_5 [0] : vector<32x128xf32> to vector<128xf32>
    %11 = vector.shape_cast %10 : vector<128xf32> to vector<1x128xf32>
    %cst_6 = arith.constant 2.000000e+00 : f32
    %12 = vector.broadcast %cst_6 : f32 to vector<1x128xf32>
    %13 = arith.addf %12, %11 : vector<1x128xf32>
    %14 = math.rsqrt %13 : vector<1x128xf32>
    %15 = arith.mulf %6, %14 : vector<1x128xf32>
    %16 = math.absf %15 : vector<1x128xf32>
    %cst_7 = arith.constant 0.707106769 : f32
    %17 = vector.broadcast %cst_7 : f32 to vector<1x128xf32>
    %18 = arith.mulf %16, %17 : vector<1x128xf32>
    %cst_8 = arith.constant 0.327591091 : f32
    %19 = vector.broadcast %cst_8 : f32 to vector<1x128xf32>
    %20 = arith.mulf %19, %18 : vector<1x128xf32>
    %cst_9 = arith.constant 1.000000e+00 : f32
    %21 = vector.broadcast %cst_9 : f32 to vector<1x128xf32>
    %22 = arith.addf %21, %20 : vector<1x128xf32>
    %cst_10 = arith.constant 1.000000e+00 : f32
    %23 = vector.broadcast %cst_10 : f32 to vector<1x128xf32>
    %24 = arith.divf %23, %22 : vector<1x128xf32>
    %cst_11 = arith.constant 1.06140542 : f32
    %25 = vector.broadcast %cst_11 : f32 to vector<1x128xf32>
    %26 = arith.mulf %24, %25 : vector<1x128xf32>
    %cst_12 = arith.constant -1.45315206 : f32
    %27 = vector.broadcast %cst_12 : f32 to vector<1x128xf32>
    %28 = arith.addf %27, %26 : vector<1x128xf32>
    %29 = arith.mulf %24, %28 : vector<1x128xf32>
    %cst_13 = arith.constant 1.42141378 : f32
    %30 = vector.broadcast %cst_13 : f32 to vector<1x128xf32>
    %31 = arith.addf %30, %29 : vector<1x128xf32>
    %32 = arith.mulf %24, %31 : vector<1x128xf32>
    %cst_14 = arith.constant -0.284496725 : f32
    %33 = vector.broadcast %cst_14 : f32 to vector<1x128xf32>
    %34 = arith.addf %33, %32 : vector<1x128xf32>
    %35 = arith.mulf %24, %34 : vector<1x128xf32>
    %cst_15 = arith.constant 0.254829586 : f32
    %36 = vector.broadcast %cst_15 : f32 to vector<1x128xf32>
    %37 = arith.addf %36, %35 : vector<1x128xf32>
    %38 = arith.mulf %24, %37 : vector<1x128xf32>
    %cst_16 = arith.constant 5.000000e-01 : f32
    %39 = vector.broadcast %cst_16 : f32 to vector<1x128xf32>
    %40 = arith.mulf %39, %38 : vector<1x128xf32>
    %cst_17 = arith.constant 0.000000e+00 : f32
    %41 = vector.broadcast %cst_17 : f32 to vector<1x128xf32>
    %42 = arith.subf %41, %18 : vector<1x128xf32>
    %43 = arith.mulf %42, %18 : vector<1x128xf32>
    %44 = math.exp %43 : vector<1x128xf32>
    %45 = arith.mulf %40, %44 : vector<1x128xf32>
    %cst_18 = arith.constant 0.000000e+00 : f32
    %46 = vector.broadcast %cst_18 : f32 to vector<1x128xf32>
    %47 = arith.cmpf oge, %15, %46 : vector<1x128xf32>
    %cst_19 = arith.constant 1.000000e+00 : f32
    %48 = vector.broadcast %cst_19 : f32 to vector<1x128xf32>
    %49 = arith.subf %48, %45 : vector<1x128xf32>
    %50 = arith.select %47, %49, %45 : vector<1x128xi1>, vector<1x128xf32>
    %c0_20 = arith.constant 0 : index
    %c0_21 = arith.constant 0 : index
    %51 = vector.load %arg4[%c0_20, %c0_21] : memref<1x128xf32, #tpu.memory_space<vmem>>, vector<1x128xf32>
    tpu.vector_store %arg4[%c0_20, %c0_21], %50 {strides = array<i32>} : memref<1x128xf32, #tpu.memory_space<vmem>>, vector<1x128xf32>,
    return
  }
  func.func @transform_0(%arg0: i32) -> (i32, i32) {
    %c0_i32 = arith.constant 0 : i32
    %c0_i32_0 = arith.constant 0 : i32
    return %c0_i32, %arg0 : i32, i32
  }
  func.func @transform_1(%arg0: i32) -> (i32, i32) {
    %c0_i32 = arith.constant 0 : i32
    %c0_i32_0 = arith.constant 0 : i32
    %c0_i32_1 = arith.constant 0 : i32
    return %c0_i32, %c0_i32_0 : i32, i32
  }
  func.func @transform_2(%arg0: i32) -> (i32, i32) {
    %c0_i32 = arith.constant 0 : i32
    %c0_i32_0 = arith.constant 0 : i32
    %c0_i32_1 = arith.constant 0 : i32
    return %c0_i32, %c0_i32_0 : i32, i32
  }
  func.func @transform_3(%arg0: i32) -> (i32, i32) {
    %c0_i32 = arith.constant 0 : i32
    %c0_i32_0 = arith.constant 0 : i32
    return %c0_i32, %arg0 : i32, i32
  }
}

</mosaic_0001>

<bundles_post_ra>
// kernel: tpu_custom_call.1
= control target key start
LH: loop header
LB: loop body
LE: loop exit
PB: predicated region body
PF: predicated region fallthrough
CT: control target
= control target key end

     0   :  { %v173_v2 = vmov 0   ;;  %s243_s0 = inlined_call_operand.vmem [shape: f32[32,128], index: 0, kind: input, shape index: {}]   ;;  %s244_s1 = inlined_call_operand.vmem [shape: f32[32,1], index: 1, kind: input, shape index: {}]   ;;  %s245_s2 = inlined_call_operand.vmem [shape: f32[32,1], index: 2, kind: input, shape index: {}]   ;;  %s246_s3 = inlined_call_operand.hbm [shape: f32[1,128], index: 3, kind: output, shape index: {}]  }
   0x1   :  { %v25_v0 = vld [vmem:[%s245_s2 + $0x10] sm:$0xff]  ;;  %v23_v1 = vld [vmem:[%s245_s2] sm:$0xff]  ;;  %142 = vset.pattern.permute.xlu1 %v173_v2  ;;  %141 = vset.pattern.permute.xlu0 %v173_v2  ;;  %v26_v3 = vld [vmem:[%s245_s2 + $0x18] sm:$0xff] }
   0x2   :  { %76 = vperm.xlu1 %142, %v25_v0   ;;  %66 = vperm.xlu0 %141, %v23_v1   ;;  %v24_v4 = vld [vmem:[%s245_s2 + $0x8] sm:$0xff] }
   0x3   :  { %8 = vsyncpa [#allocation3], 0  ;;  %v20_v5 = vld [vmem:[%s244_s1 + $0x8] sm:$0xff]  ;;  %v19_v6 = vld [vmem:[%s244_s1] sm:$0xff] }
   0x4   :  { %v22_v7 = vld [vmem:[%s244_s1 + $0x18] sm:$0xff]  ;;  %v21_v8 = vld [vmem:[%s244_s1 + $0x10] sm:$0xff]  ;;  %v15_v9 = vld [vmem:[%s243_s0] sm:$0xff] }
   0x5   :  { %v16_v10 = vld [vmem:[%s243_s0 + $0x8] sm:$0xff]  ;;  %v17_v12 = vld [vmem:[%s243_s0 + $0x10] sm:$0xff]  ;;  %v60_v14 = vmul.f32 %v15_v9, %v15_v9  ;;  %v18_v16 = vld [vmem:[%s243_s0 + $0x18] sm:$0xff]  ;;  %s174_s0 = smov [#allocation2]  }
   0x6   :  { %81 = vperm.xlu1 %142, %v26_v3   ;;  %71 = vperm.xlu0 %141, %v24_v4   ;;  %v61_v15 = vmul.f32 %v16_v10, %v16_v10  ;;  %v62_v17 = vmul.f32 %v17_v12, %v17_v12  ;;  %v63_v21 = vmul.f32 %v18_v16, %v18_v16  ;;  %s131_s7 = sshll.u32 %s174_s0, 4  ;;  %s132_s7 = int_to_ptr.vmem [resolvable:$true] %s131_s7 }
   0x7   :  { %s149_s8 = scalar_lea.vmem %s132_s7, 16  ;;  %s153_s9 = scalar_lea.vmem %s132_s7, 32 }
   0x8   :  { %p150_p0 = scmp.ne.s32.totalorder %s132_s7, %s149_s8  ;;  %p154_p1 = scmp.lt.s32.totalorder %s132_s7, %s132_s7 }
   0x9   :  { %p155_p2 = scmp.lt.s32.totalorder %s153_s9, %s149_s8 }
   0xa   :  { %34 = vperm.xlu1 %142, %v20_v5   ;;  %29 = vperm.xlu0 %141, %v19_v6  }
   0xb   :  { %p156_p3 = por %p155_p2, %p154_p1 }
   0xd   :  { %p157_p4 = pnand %p156_p3, %p150_p0 }
   0xe   :  { %44 = vperm.xlu1 %142, %v22_v7   ;;  %39 = vperm.xlu0 %141, %v21_v8  }
  0x81   :  { %v77_v11 = vpop.permute.xlu1 %76  ;;  %v67_v13 = vpop.permute.xlu0 %66 }
  0x82   :  { %v84_v20 = vmul.f32 %v67_v13, %v60_v14  ;;  %v86_v23 = vmul.f32 %v77_v11, %v62_v17 }
  0x85   :  { %v82_v18 = vpop.permute.xlu1 %81  ;;  %v72_v19 = vpop.permute.xlu0 %71 }
  0x86   :  { %v85_v22 = vmul.f32 %v72_v19, %v61_v15  ;;  %v87_v27 = vmul.f32 %v82_v18, %v63_v21 }
  0x88   :  { %v88_v24 = vadd.f32 %v85_v22, %v84_v20 }
  0x89   :  { %v35_v25 = vpop.permute.xlu1 %34  ;;  %v30_v26 = vpop.permute.xlu0 %29 }
  0x8a   :  { %v89_v28 = vadd.f32 %v88_v24, %v86_v23  ;;  %v48_v29 = vmul.f32 %v35_v25, %v16_v10  ;;  %v47_v30 = vmul.f32 %v30_v26, %v15_v9 }
  0x8c   :  { %v90_v31 = vadd.f32 %v89_v28, %v87_v27  ;;  %v51_v35 = vadd.f32 %v48_v29, %v47_v30 }
  0x8d   :  { %v45_v32 = vpop.permute.xlu1 %44  ;;  %v40_v33 = vpop.permute.xlu0 %39 }
  0x8e   :  { %v91_v34 = vrot.slane %v90_v31, 4  ;;  %v49_v36 = vmul.f32 %v40_v33, %v17_v12  ;;  %v50_v38 = vmul.f32 %v45_v32, %v18_v16 }
  0x90   :  { %v92_v37 = vadd.f32 %v91_v34, %v90_v31  ;;  %v52_v39 = vadd.f32 %v51_v35, %v49_v36 }
  0x92   :  { %v93_v40 = vrot.slane %v92_v37, 2  ;;  %v53_v41 = vadd.f32 %v52_v39, %v50_v38 }
  0x94   :  { %v94_v42 = vadd.f32 %v93_v40, %v92_v37  ;;  %v54_v43 = vrot.slane %v53_v41, 4 }
  0x96   :  { %v95_v44 = vrot.slane %v94_v42, 1  ;;  %v55_v45 = vadd.f32 %v54_v43, %v53_v41 }
  0x98   :  { %v96_v46 = vadd.f32 %v95_v44, %v94_v42  ;;  %v56_v47 = vrot.slane %v55_v45, 2 }
  0x9a   :  { %v97_v48 = vadd.f32 2.0, %v96_v46  ;;  %v57_v49 = vadd.f32 %v56_v47, %v55_v45 }
  0x9c   :  { %143 = vrsqrt.f32 %v97_v48  ;;  %v58_v50 = vrot.slane %v57_v49, 1 }
  0x9e   :  { %v59_v51 = vadd.f32 %v58_v50, %v57_v49 }
  0xa6   :  { %v144_v52 = vpop.eup %143 }
  0xa7   :  { %v99_v53 = vmul.f32 %v144_v52, %v59_v51 }
  0xa9   :  { %v100_v54 = vand.u32 2147483647, %v99_v53  ;;  %vm121_vm0 = vcmp.ge.f32.partialorder %v99_v53, 0.0 }
  0xab   :  { %v101_v55 = vmul.f32 0.70710677, %v100_v54 }
  0xad   :  { %v102_v56 = vmul.f32 0.3275911, %v101_v55  ;;  %v116_v58 = vsub.f32 0.0, %v101_v55 }
  0xaf   :  { %v103_v57 = vadd.f32 1.0, %v102_v56  ;;  %v117_v61 = vmul.f32 %v116_v58, %v101_v55 }
  0xb1   :  { %145 = vrcp.f32 %v103_v57  ;;  %v118_v0 = vmul.f32 1.442695, %v117_v61 }
  0xb3   :  { %147 = vpow2.f32 %v118_v0 }
  0xbb   :  { %v146_v59 = vpop.eup %145 }
  0xbc   :  { %v106_v60 = vmul.f32 1.0614054, %v146_v59 }
  0xbd   :  { %v148_v8 = vpop.eup %147 }
  0xbe   :  { %v107_v62 = vadd.f32 -1.4531521, %v106_v60 }
  0xc0   :  { %v108_v63 = vmul.f32 %v146_v59, %v107_v62 }
  0xc2   :  { %v109_v1 = vadd.f32 1.4214138, %v108_v63 }
  0xc4   :  { %v110_v2 = vmul.f32 %v146_v59, %v109_v1 }
  0xc6   :  { %v111_v3 = vadd.f32 -0.28449672, %v110_v2 }
  0xc8   :  { %v112_v4 = vmul.f32 %v146_v59, %v111_v3 }
  0xca   :  { %v113_v5 = vadd.f32 0.2548296, %v112_v4 }
  0xcc   :  { %v114_v6 = vmul.f32 %v146_v59, %v113_v5 }
  0xce   :  { %v115_v7 = vmul.f32 0.5, %v114_v6 }
  0xd0   :  { %v120_v9 = vmul.f32 %v148_v8, %v115_v7 }
  0xd2   :  { %v122_v10 = vsub.f32 1.0, %v120_v9 }
  0xd4   :  { %v123_v11 = vsel %vm121_vm0, %v122_v10, %v120_v9 }
  0xd5   :  { %124 = vst [vmem:[#allocation2] sm:$0x1] %v123_v11 }
  0xd6   :  { %160 = shalt.err (!%p157_p4)
}
  0xd7   :  { %s161_s12 = scalar_lea.hbm %s246_s3, 16 }
  0xd8   :  { %p162_p5 = scmp.ne.s32.totalorder %s246_s3, %s161_s12  ;;  %p165_p6 = scmp.lt.u32.totalorder %s161_s12, %s246_s3 }
  0xda   :  { %p167_p7 = pnand %p165_p6, %p162_p5 }
  0xdc   :  { %170 = shalt.err (!%p167_p7)
}
  0xdd   :  { %134 = dma.vmem_to_hbm [thread:$0]  %s132_s7, 16, %s246_s3, [#allocation3]  }
  0xde   :  { %171 = dma.done.wait [#allocation3], 16  }
  0xdf   :  { %172 = vsyncadd [#allocation3], 4294967280 }
  0xe0   :  { %138 = vsyncpa [#allocation3], 1 }

</bundles_post_ra>
